<compile_context>
chip_gen: v7x
topology: tpu7x:2x2x1
jax: 0.10.0
libtpu: 0.0.40
codegen_flags: <defaults>
</compile_context>

<pallas_src>
import functools

import jax
import jax.numpy as jnp
from jax import lax
from jax.experimental import pallas as pl
from jax.experimental.pallas import tpu as pltpu

_LANE = 128


def _round_up(a, b):
    return ((a + b - 1) // b) * b


@functools.lru_cache(maxsize=None)
def _vmem_limit_bytes():
    """Generation-aware scoped-VMEM limit (~75% of per-core VMEM)."""
    try:
        cap = int(pltpu.get_tpu_info().vmem_capacity_bytes)
        return max(32 * 1024 * 1024, (cap * 3) // 4)
    except Exception:  # pragma: no cover - conservative fallback
        return 48 * 1024 * 1024


# ----------------------------------------------------------------------------
# Fused head kernel:  h = relu(sum_taps tap @ W5_tap + b5);  y = h @ Wf + bf
# grid = (N, CPH // tch);  axis 1 is an "arbitrary" reduction over hidden-channel
# tiles accumulated in an f32 VMEM scratch (pl.when init / finalize).
# ----------------------------------------------------------------------------
def _fcn_head_kernel(r00, r01, r02, r10, r11, r12,
                     w5_ref, b5_ref, wf_ref, bf_ref,
                     y_ref, acc_ref, *, m_img, wo):
    ct = pl.program_id(1)

    @pl.when(ct == 0)
    def _init():
        acc_ref[...] = jnp.zeros_like(acc_ref)

    row_phase = ((r00, r01, r02), (r10, r11, r12))
    tch = w5_ref.shape[2]

    # 3x3 stride-2 conv == 9 accumulated matmuls over pre-phase-split inputs.
    # Tap (i, j): row parity i%2, row offset i//2 (a static row slice of the
    # flattened (Hh*Wo, C) slab), column variant j already applied outside.
    h = jnp.zeros((m_img, tch), jnp.float32)
    for i in range(3):
        di = i // 2
        for j in range(3):
            tap_ref = row_phase[i % 2][j]
            a = tap_ref[0, di * wo: di * wo + m_img, :]          # (m_img, C) bf16
            h = h + jnp.dot(a, w5_ref[3 * i + j],
                            preferred_element_type=jnp.float32)  # MXU, f32 acc
    h = jnp.maximum(h + b5_ref[...], 0.0)                        # bias + ReLU

    # fconv5 (1x1 conv) fused: bf16 operands, f32 accumulation across ct tiles.
    acc_ref[...] += jnp.dot(h.astype(jnp.bfloat16), wf_ref[...],
                            preferred_element_type=jnp.float32)

    @pl.when(ct == pl.num_programs(1) - 1)
    def _finalize():
        y_ref[0] = (acc_ref[...] + bf_ref[...]).astype(y_ref.dtype)


def fcn32_head_pallas(rf, w5p, b5p, wfp, bfp, *, m_img, wo, tch=512):
    """rf: 6 phase slabs (N, Hh*Wo, C) bf16; returns (N, Ho*Wo, CPO) bf16."""
    n = rf[0].shape[0]
    hhwo = rf[0].shape[1]
    c_in = rf[0].shape[2]
    cph = w5p.shape[2]
    cpo = wfp.shape[1]

    # Hidden-channel reduction tile: multiple of 128 that divides CPH.
    tch = min(tch, cph)
    while cph % tch:
        tch -= _LANE
    n_ct = cph // tch
    grid = (n, n_ct)

    flops = 2 * n * m_img * (9 * c_in * cph + cph * cpo)
    bytes_accessed = (6 * n * hhwo * c_in * 2 + 9 * c_in * cph * 2 + cph * 4
                      + cph * cpo * 2 + cpo * 4 + n * m_img * cpo * 2)

    kernel = functools.partial(_fcn_head_kernel, m_img=m_img, wo=wo)
    phase_spec = pl.BlockSpec((1, hhwo, c_in), lambda n_, ct: (n_, 0, 0))

    return pl.pallas_call(
        kernel,
        out_shape=jax.ShapeDtypeStruct((n, m_img, cpo), jnp.bfloat16),
        grid=grid,
        in_specs=[phase_spec] * 6 + [
            pl.BlockSpec((9, c_in, tch), lambda n_, ct: (0, 0, ct)),
            pl.BlockSpec((1, tch), lambda n_, ct: (0, ct)),
            pl.BlockSpec((tch, cpo), lambda n_, ct: (ct, 0)),
            pl.BlockSpec((1, cpo), lambda n_, ct: (0, 0)),
        ],
        out_specs=pl.BlockSpec((1, m_img, cpo), lambda n_, ct: (n_, 0, 0)),
        scratch_shapes=[pltpu.VMEM((m_img, cpo), jnp.float32)],
        compiler_params=pltpu.CompilerParams(
            dimension_semantics=("parallel", "arbitrary"),
            vmem_limit_bytes=_vmem_limit_bytes()),
        cost_estimate=pl.CostEstimate(flops=flops, transcendentals=0,
                                      bytes_accessed=bytes_accessed),
    )(*rf, w5p, b5p, wfp, bfp)


# ----------------------------------------------------------------------------
# Bilinear upsample (align_corners=True), channel-last, lane-dense.
# out_tile[(H*W) rows, CPO lanes] = B_tile @ Y   with   B = kron(Wh, Ww).
# ----------------------------------------------------------------------------
def bilinear_matrix(out_size, in_size):
    """W (out_size, in_size) s.t. out = W @ in, align_corners=True (f32)."""
    o = jnp.arange(out_size, dtype=jnp.float32)
    scale = (in_size - 1) / (out_size - 1) if out_size > 1 else 0.0
    src = o * scale
    i0 = jnp.clip(jnp.floor(src).astype(jnp.int32), 0, in_size - 1)
    i1 = jnp.clip(i0 + 1, 0, in_size - 1)
    frac = src - i0.astype(jnp.float32)
    w = jnp.zeros((out_size, in_size), jnp.float32)
    rows = jnp.arange(out_size)
    w = w.at[rows, i0].add(1.0 - frac)
    w = w.at[rows, i1].add(frac)
    return w


def _upsample_kernel(y_ref, b_ref, o_ref):
    o_ref[0] = jnp.dot(b_ref[...], y_ref[0],
                       preferred_element_type=jnp.float32).astype(o_ref.dtype)


def upsample_bilinear_pallas(y2d, h_out, w_out, h_in, w_in, *, tr=1024):
    """y2d: (N, Hin*Win, CPO) bf16 -> (N, Hout*Wout, CPO) f32, align_corners=True."""
    n, hw_in, cpo = y2d.shape
    hw = h_out * w_out
    tr = min(tr, hw)
    hw_pad = _round_up(hw, tr)

    wh = bilinear_matrix(h_out, h_in)
    ww = bilinear_matrix(w_out, w_in)
    b = jnp.einsum("Hh,Ww->HWhw", wh, ww).reshape(hw, hw_in).astype(jnp.bfloat16)
    if hw_pad != hw:
        b = jnp.pad(b, ((0, hw_pad - hw), (0, 0)))

    grid = (n, hw_pad // tr)
    flops = 2 * n * hw_pad * hw_in * cpo
    bytes_accessed = n * hw_in * cpo * 2 + hw_pad * hw_in * 2 + n * hw_pad * cpo * 4

    out = pl.pallas_call(
        _upsample_kernel,
        out_shape=jax.ShapeDtypeStruct((n, hw_pad, cpo), jnp.float32),
        grid=grid,
        in_specs=[pl.BlockSpec((1, hw_in, cpo), lambda n_, r: (n_, 0, 0)),
                  pl.BlockSpec((tr, hw_in), lambda n_, r: (r, 0))],
        out_specs=pl.BlockSpec((1, tr, cpo), lambda n_, r: (n_, r, 0)),
        compiler_params=pltpu.CompilerParams(
            dimension_semantics=("parallel", "parallel"),
            vmem_limit_bytes=_vmem_limit_bytes()),
        cost_estimate=pl.CostEstimate(flops=flops, transcendentals=0,
                                      bytes_accessed=bytes_accessed),
    )(y2d, b)
    return out[:, :hw, :]


# ----------------------------------------------------------------------------
# Parameter init + one-time prepack (reshape / transpose / 128-pad / bf16 cast).
# ----------------------------------------------------------------------------
def init_params(key, c_in, c_hid, n_classes):
    k1, k2, k3, k4 = jax.random.split(key, 4)
    return {
        "w5": jax.random.normal(k1, (c_hid, c_in, 3, 3), jnp.float32) * 0.1,
        "b5": jax.random.normal(k2, (c_hid,), jnp.float32) * 0.01,
        "wf": jax.random.normal(k3, (n_classes, c_hid, 1, 1), jnp.float32) * 0.1,
        "bf": jax.random.normal(k4, (n_classes,), jnp.float32) * 0.01,
    }


def prepack_params(params):
    c_hid, c_in, kh, kw = params["w5"].shape
    n_classes = params["wf"].shape[0]
    cph = _round_up(c_hid, _LANE)
    cpo = _round_up(n_classes, _LANE)

    # per-tap (C_in, C_hid) matrices, tap index t = 3*i + j
    w5 = jnp.transpose(params["w5"], (2, 3, 1, 0)).reshape(kh * kw, c_in, c_hid)
    w5p = jnp.zeros((kh * kw, c_in, cph), jnp.bfloat16).at[:, :, :c_hid].set(
        w5.astype(jnp.bfloat16))
    b5p = jnp.zeros((1, cph), jnp.float32).at[0, :c_hid].set(params["b5"])

    wf = params["wf"].reshape(n_classes, c_hid).T                  # (c_hid, n_classes)
    wfp = jnp.zeros((cph, cpo), jnp.bfloat16).at[:c_hid, :n_classes].set(
        wf.astype(jnp.bfloat16))
    bfp = jnp.zeros((1, cpo), jnp.float32).at[0, :n_classes].set(params["bf"])

    return {"w5p": w5p, "b5p": b5p, "wfp": wfp, "bfp": bfp}


# ----------------------------------------------------------------------------
# Forward:  y = fconv5(features5(x));  y = upsample_bilinear(y, x.shape[2:])
# ----------------------------------------------------------------------------
@functools.partial(jax.jit, static_argnames=("n_classes",))
def fcn32_forward(packed, x, *, n_classes):
    N, C, H, W = x.shape
    Ho = (H - 1) // 2 + 1
    Wo = (W - 1) // 2 + 1
    Hh = Ho + 1

    # Cheap stride-2 phase split (NHWC, bf16): 6 contiguous slabs, each tap in the
    # kernel is then a static row-offset slice of one slab (no 9x im2col tensor).
    x_nhwc = jnp.transpose(x.astype(jnp.bfloat16), (0, 2, 3, 1))
    row_pad_hi = 2 * Ho + 1 - H                    # 1 (H even) or 2 (H odd)
    xp = jnp.pad(x_nhwc, ((0, 0), (1, row_pad_hi), (1, 1), (0, 0)))

    rf = []
    for pr in range(2):                            # row parity of the tap
        for j in range(3):                         # column tap (offset pre-applied)
            r = xp[:, pr: pr + 2 * Hh: 2, j: j + 2 * Wo: 2, :]   # (N, Hh, Wo, C)
            rf.append(r.reshape(N, Hh * Wo, C))

    y2d = fcn32_head_pallas(rf, packed["w5p"], packed["b5p"],
                            packed["wfp"], packed["bfp"],
                            m_img=Ho * Wo, wo=Wo)                 # (N, Ho*Wo, CPO) bf16

    up = upsample_bilinear_pallas(y2d, H, W, Ho, Wo)              # (N, H*W, CPO) f32
    out = up[:, :, :n_classes].reshape(N, H, W, n_classes)
    return jnp.transpose(out, (0, 3, 1, 2))                       # NCHW module output


# ----------------------------------------------------------------------------
# Pure-JAX f32 reference (for validation only)
# ----------------------------------------------------------------------------
def fcn32_reference(params, x):
    dn = ("NCHW", "OIHW", "NCHW")
    y = lax.conv_general_dilated(x, params["w5"], window_strides=(2, 2),
                                 padding=((1, 1), (1, 1)), dimension_numbers=dn,
                                 precision=lax.Precision.HIGHEST)
    y = jnp.maximum(y + params["b5"][None, :, None, None], 0.0)
    y = lax.conv_general_dilated(y, params["wf"], window_strides=(1, 1),
                                 padding=((0, 0), (0, 0)), dimension_numbers=dn,
                                 precision=lax.Precision.HIGHEST)
    y = y + params["bf"][None, :, None, None]
    H, W = x.shape[2], x.shape[3]
    Ho, Wo = y.shape[2], y.shape[3]
    wh = bilinear_matrix(H, Ho)
    ww = bilinear_matrix(W, Wo)
    return jnp.einsum("Hh,nchw,Ww->ncHW", wh, y, ww,
                      precision=lax.Precision.HIGHEST)


if __name__ == "__main__":
    key = jax.random.PRNGKey(0)
    kx, kp = jax.random.split(key)

    N, C_IN, H, W = 2, 4, 16, 16
    C_HID, N_CLASSES = 16, 5

    x = jax.random.normal(kx, (N, C_IN, H, W), jnp.float32)
    params = init_params(kp, C_IN, C_HID, N_CLASSES)
    packed = prepack_params(params)

    out = fcn32_forward(packed, x, n_classes=N_CLASSES)
    out = jax.block_until_ready(out)

    assert out.shape == (N, N_CLASSES, H, W), out.shape
    assert bool(jnp.all(jnp.isfinite(out)))

    ref = fcn32_reference(params, x)
    max_err = float(jnp.max(jnp.abs(out - ref)))
    assert max_err < 1e-1, f"max abs err vs f32 reference: {max_err}"

    print("KERNEL_OK")
</pallas_src>

<mosaic_0001>
module attributes {stable_mosaic.version = 11 : i64} {
  func.func private @main(%arg0: i32) attributes {dimension_semantics = [#tpu.dimension_semantics<core_parallel>], iteration_bounds = array<i64: 2>, tpu.core_type = #tpu.core_type<sc_scalar_subcore>, window_params = []} {
    return
  }
}

module attributes {stable_mosaic.version = 11 : i64} {
  func.func private @main(%arg0: i32) attributes {dimension_semantics = [#tpu.dimension_semantics<core_parallel>], iteration_bounds = array<i64: 2>, tpu.core_type = #tpu.core_type<sc_scalar_subcore>, window_params = []} {
    return
  }
}

module attributes {stable_mosaic.version = 11 : i64} {
  func.func @_fcn_head_kernel(%arg0: i32, %arg1: i32, %arg2: memref<1x72x4xbf16, #tpu.memory_space<vmem>>, %arg3: memref<1x72x4xbf16, #tpu.memory_space<vmem>>, %arg4: memref<1x72x4xbf16, #tpu.memory_space<vmem>>, %arg5: memref<1x72x4xbf16, #tpu.memory_space<vmem>>, %arg6: memref<1x72x4xbf16, #tpu.memory_space<vmem>>, %arg7: memref<1x72x4xbf16, #tpu.memory_space<vmem>>, %arg8: memref<9x4x128xbf16, #tpu.memory_space<vmem>>, %arg9: memref<1x128xf32, #tpu.memory_space<vmem>>, %arg10: memref<128x128xbf16, #tpu.memory_space<vmem>>, %arg11: memref<1x128xf32, #tpu.memory_space<vmem>>, %arg12: memref<1x64x128xbf16, #tpu.memory_space<vmem>>, %arg13: memref<64x128xf32, #tpu.memory_space<vmem>>) attributes {dimension_semantics = [#tpu.dimension_semantics<parallel>, #tpu.dimension_semantics<arbitrary>], iteration_bounds = array<i64: 2, 1>, scalar_prefetch = 0 : i64, scratch_operands = 1 : i64, tpu.core_type = #tpu.core_type<tc>, window_params = [{transform_indices = @transform_0, window_bounds = array<i64: 1, 72, 4>}, {transform_indices = @transform_1, window_bounds = array<i64: 1, 72, 4>}, {transform_indices = @transform_2, window_bounds = array<i64: 1, 72, 4>}, {transform_indices = @transform_3, window_bounds = array<i64: 1, 72, 4>}, {transform_indices = @transform_4, window_bounds = array<i64: 1, 72, 4>}, {transform_indices = @transform_5, window_bounds = array<i64: 1, 72, 4>}, {transform_indices = @transform_6, window_bounds = array<i64: 9, 4, 128>}, {transform_indices = @transform_7, window_bounds = array<i64: 1, 128>}, {transform_indices = @transform_8, window_bounds = array<i64: 128, 128>}, {pipeline_mode = #tpu.pipeline_mode<synchronous>, transform_indices = @transform_9, window_bounds = array<i64: 1, 128>}, {transform_indices = @transform_10, window_bounds = array<i64: 1, 64, 128>}]} {
    %c0_i32 = arith.constant 0 : i32
    %0 = arith.cmpi eq, %arg1, %c0_i32 : i32
    %1 = arith.extui %0 : i1 to i32
    %c0_i32_0 = arith.constant 0 : i32
    %2 = arith.cmpi ne, %1, %c0_i32_0 : i32
    scf.if %2 {
      %cst_67 = arith.constant 0.000000e+00 : f32
      %72 = vector.broadcast %cst_67 : f32 to vector<64x128xf32>
      %c0_68 = arith.constant 0 : index
      %c0_69 = arith.constant 0 : index
      %73 = vector.load %arg13[%c0_68, %c0_69] : memref<64x128xf32, #tpu.memory_space<vmem>>, vector<64x128xf32>
      tpu.vector_store %arg13[%c0_68, %c0_69], %72 {strides = array<i32>} : memref<64x128xf32, #tpu.memory_space<vmem>>, vector<64x128xf32>,
    } else {
    }
    %cst = arith.constant 0.000000e+00 : f32
    %3 = vector.broadcast %cst : f32 to vector<64x128xf32>
    %c0 = arith.constant 0 : index
    %c0_1 = arith.constant 0 : index
    %c0_2 = arith.constant 0 : index
    %4 = vector.load %arg2[%c0, %c0_1, %c0_2] : memref<1x72x4xbf16, #tpu.memory_space<vmem>>, vector<1x64x4xbf16>
    %5 = vector.shape_cast %4 : vector<1x64x4xbf16> to vector<64x4xbf16>
    %c0_3 = arith.constant 0 : index
    %c0_4 = arith.constant 0 : index
    %c0_5 = arith.constant 0 : index
    %6 = vector.load %arg8[%c0_3, %c0_4, %c0_5] : memref<9x4x128xbf16, #tpu.memory_space<vmem>>, vector<1x4x128xbf16>
    %7 = vector.shape_cast %6 : vector<1x4x128xbf16> to vector<4x128xbf16>
    %cst_6 = arith.constant dense<0.000000e+00> : vector<64x128xf32>
    %8 = tpu.matmul %5, %7, %cst_6 {dimension_numbers = #tpu.dot_dimension_numbers<[1], [0], [0], [1], [0, 0, 1, 1], [], []>} : vector<64x4xbf16>, vector<4x128xbf16>, vector<64x128xf32> -> vector<64x128xf32>
    %9 = arith.addf %3, %8 : vector<64x128xf32>
    %c0_7 = arith.constant 0 : index
    %c0_8 = arith.constant 0 : index
    %c0_9 = arith.constant 0 : index
    %10 = vector.load %arg3[%c0_7, %c0_8, %c0_9] : memref<1x72x4xbf16, #tpu.memory_space<vmem>>, vector<1x64x4xbf16>
    %11 = vector.shape_cast %10 : vector<1x64x4xbf16> to vector<64x4xbf16>
    %c1 = arith.constant 1 : index
    %c0_10 = arith.constant 0 : index
    %c0_11 = arith.constant 0 : index
    %12 = vector.load %arg8[%c1, %c0_10, %c0_11] : memref<9x4x128xbf16, #tpu.memory_space<vmem>>, vector<1x4x128xbf16>
    %13 = vector.shape_cast %12 : vector<1x4x128xbf16> to vector<4x128xbf16>
    %cst_12 = arith.constant dense<0.000000e+00> : vector<64x128xf32>
    %14 = tpu.matmul %11, %13, %cst_12 {dimension_numbers = #tpu.dot_dimension_numbers<[1], [0], [0], [1], [0, 0, 1, 1], [], []>} : vector<64x4xbf16>, vector<4x128xbf16>, vector<64x128xf32> -> vector<64x128xf32>
    %15 = arith.addf %9, %14 : vector<64x128xf32>
    %c0_13 = arith.constant 0 : index
    %c0_14 = arith.constant 0 : index
    %c0_15 = arith.constant 0 : index
    %16 = vector.load %arg4[%c0_13, %c0_14, %c0_15] : memref<1x72x4xbf16, #tpu.memory_space<vmem>>, vector<1x64x4xbf16>
    %17 = vector.shape_cast %16 : vector<1x64x4xbf16> to vector<64x4xbf16>
    %c2 = arith.constant 2 : index
    %c0_16 = arith.constant 0 : index
    %c0_17 = arith.constant 0 : index
    %18 = vector.load %arg8[%c2, %c0_16, %c0_17] : memref<9x4x128xbf16, #tpu.memory_space<vmem>>, vector<1x4x128xbf16>
    %19 = vector.shape_cast %18 : vector<1x4x128xbf16> to vector<4x128xbf16>
    %cst_18 = arith.constant dense<0.000000e+00> : vector<64x128xf32>
    %20 = tpu.matmul %17, %19, %cst_18 {dimension_numbers = #tpu.dot_dimension_numbers<[1], [0], [0], [1], [0, 0, 1, 1], [], []>} : vector<64x4xbf16>, vector<4x128xbf16>, vector<64x128xf32> -> vector<64x128xf32>
    %21 = arith.addf %15, %20 : vector<64x128xf32>
    %c0_19 = arith.constant 0 : index
    %c0_20 = arith.constant 0 : index
    %c0_21 = arith.constant 0 : index
    %22 = vector.load %arg5[%c0_19, %c0_20, %c0_21] : memref<1x72x4xbf16, #tpu.memory_space<vmem>>, vector<1x64x4xbf16>
    %23 = vector.shape_cast %22 : vector<1x64x4xbf16> to vector<64x4xbf16>
    %c3 = arith.constant 3 : index
    %c0_22 = arith.constant 0 : index
    %c0_23 = arith.constant 0 : index
    %24 = vector.load %arg8[%c3, %c0_22, %c0_23] : memref<9x4x128xbf16, #tpu.memory_space<vmem>>, vector<1x4x128xbf16>
    %25 = vector.shape_cast %24 : vector<1x4x128xbf16> to vector<4x128xbf16>
    %cst_24 = arith.constant dense<0.000000e+00> : vector<64x128xf32>
    %26 = tpu.matmul %23, %25, %cst_24 {dimension_numbers = #tpu.dot_dimension_numbers<[1], [0], [0], [1], [0, 0, 1, 1], [], []>} : vector<64x4xbf16>, vector<4x128xbf16>, vector<64x128xf32> -> vector<64x128xf32>
    %27 = arith.addf %21, %26 : vector<64x128xf32>
    %c0_25 = arith.constant 0 : index
    %c0_26 = arith.constant 0 : index
    %c0_27 = arith.constant 0 : index
    %28 = vector.load %arg6[%c0_25, %c0_26, %c0_27] : memref<1x72x4xbf16, #tpu.memory_space<vmem>>, vector<1x64x4xbf16>
    %29 = vector.shape_cast %28 : vector<1x64x4xbf16> to vector<64x4xbf16>
    %c4 = arith.constant 4 : index
    %c0_28 = arith.constant 0 : index
    %c0_29 = arith.constant 0 : index
    %30 = vector.load %arg8[%c4, %c0_28, %c0_29] : memref<9x4x128xbf16, #tpu.memory_space<vmem>>, vector<1x4x128xbf16>
    %31 = vector.shape_cast %30 : vector<1x4x128xbf16> to vector<4x128xbf16>
    %cst_30 = arith.constant dense<0.000000e+00> : vector<64x128xf32>
    %32 = tpu.matmul %29, %31, %cst_30 {dimension_numbers = #tpu.dot_dimension_numbers<[1], [0], [0], [1], [0, 0, 1, 1], [], []>} : vector<64x4xbf16>, vector<4x128xbf16>, vector<64x128xf32> -> vector<64x128xf32>
    %33 = arith.addf %27, %32 : vector<64x128xf32>
    %c0_31 = arith.constant 0 : index
    %c0_32 = arith.constant 0 : index
    %c0_33 = arith.constant 0 : index
    %34 = vector.load %arg7[%c0_31, %c0_32, %c0_33] : memref<1x72x4xbf16, #tpu.memory_space<vmem>>, vector<1x64x4xbf16>
    %35 = vector.shape_cast %34 : vector<1x64x4xbf16> to vector<64x4xbf16>
    %c5 = arith.constant 5 : index
    %c0_34 = arith.constant 0 : index
    %c0_35 = arith.constant 0 : index
    %36 = vector.load %arg8[%c5, %c0_34, %c0_35] : memref<9x4x128xbf16, #tpu.memory_space<vmem>>, vector<1x4x128xbf16>
    %37 = vector.shape_cast %36 : vector<1x4x128xbf16> to vector<4x128xbf16>
    %cst_36 = arith.constant dense<0.000000e+00> : vector<64x128xf32>
    %38 = tpu.matmul %35, %37, %cst_36 {dimension_numbers = #tpu.dot_dimension_numbers<[1], [0], [0], [1], [0, 0, 1, 1], [], []>} : vector<64x4xbf16>, vector<4x128xbf16>, vector<64x128xf32> -> vector<64x128xf32>
    %39 = arith.addf %33, %38 : vector<64x128xf32>
    %c0_37 = arith.constant 0 : index
    %c8 = arith.constant 8 : index
    %c0_38 = arith.constant 0 : index
    %40 = vector.load %arg2[%c0_37, %c8, %c0_38] : memref<1x72x4xbf16, #tpu.memory_space<vmem>>, vector<1x64x4xbf16>
    %41 = vector.shape_cast %40 : vector<1x64x4xbf16> to vector<64x4xbf16>
    %c6 = arith.constant 6 : index
    %c0_39 = arith.constant 0 : index
    %c0_40 = arith.constant 0 : index
    %42 = vector.load %arg8[%c6, %c0_39, %c0_40] : memref<9x4x128xbf16, #tpu.memory_space<vmem>>, vector<1x4x128xbf16>
    %43 = vector.shape_cast %42 : vector<1x4x128xbf16> to vector<4x128xbf16>
    %cst_41 = arith.constant dense<0.000000e+00> : vector<64x128xf32>
    %44 = tpu.matmul %41, %43, %cst_41 {dimension_numbers = #tpu.dot_dimension_numbers<[1], [0], [0], [1], [0, 0, 1, 1], [], []>} : vector<64x4xbf16>, vector<4x128xbf16>, vector<64x128xf32> -> vector<64x128xf32>
    %45 = arith.addf %39, %44 : vector<64x128xf32>
    %c0_42 = arith.constant 0 : index
    %c8_43 = arith.constant 8 : index
    %c0_44 = arith.constant 0 : index
    %46 = vector.load %arg3[%c0_42, %c8_43, %c0_44] : memref<1x72x4xbf16, #tpu.memory_space<vmem>>, vector<1x64x4xbf16>
    %47 = vector.shape_cast %46 : vector<1x64x4xbf16> to vector<64x4xbf16>
    %c7 = arith.constant 7 : index
    %c0_45 = arith.constant 0 : index
    %c0_46 = arith.constant 0 : index
    %48 = vector.load %arg8[%c7, %c0_45, %c0_46] : memref<9x4x128xbf16, #tpu.memory_space<vmem>>, vector<1x4x128xbf16>
    %49 = vector.shape_cast %48 : vector<1x4x128xbf16> to vector<4x128xbf16>
    %cst_47 = arith.constant dense<0.000000e+00> : vector<64x128xf32>
    %50 = tpu.matmul %47, %49, %cst_47 {dimension_numbers = #tpu.dot_dimension_numbers<[1], [0], [0], [1], [0, 0, 1, 1], [], []>} : vector<64x4xbf16>, vector<4x128xbf16>, vector<64x128xf32> -> vector<64x128xf32>
    %51 = arith.addf %45, %50 : vector<64x128xf32>
    %c0_48 = arith.constant 0 : index
    %c8_49 = arith.constant 8 : index
    %c0_50 = arith.constant 0 : index
    %52 = vector.load %arg4[%c0_48, %c8_49, %c0_50] : memref<1x72x4xbf16, #tpu.memory_space<vmem>>, vector<1x64x4xbf16>
    %53 = vector.shape_cast %52 : vector<1x64x4xbf16> to vector<64x4xbf16>
    %c8_51 = arith.constant 8 : index
    %c0_52 = arith.constant 0 : index
    %c0_53 = arith.constant 0 : index
    %54 = vector.load %arg8[%c8_51, %c0_52, %c0_53] : memref<9x4x128xbf16, #tpu.memory_space<vmem>>, vector<1x4x128xbf16>
    %55 = vector.shape_cast %54 : vector<1x4x128xbf16> to vector<4x128xbf16>
    %cst_54 = arith.constant dense<0.000000e+00> : vector<64x128xf32>
    %56 = tpu.matmul %53, %55, %cst_54 {dimension_numbers = #tpu.dot_dimension_numbers<[1], [0], [0], [1], [0, 0, 1, 1], [], []>} : vector<64x4xbf16>, vector<4x128xbf16>, vector<64x128xf32> -> vector<64x128xf32>
    %57 = arith.addf %51, %56 : vector<64x128xf32>
    %c0_55 = arith.constant 0 : index
    %c0_56 = arith.constant 0 : index
    %58 = vector.load %arg9[%c0_55, %c0_56] : memref<1x128xf32, #tpu.memory_space<vmem>>, vector<1x128xf32>
    %59 = vector.broadcast %58 : vector<1x128xf32> to vector<64x128xf32>
    %60 = arith.addf %57, %59 : vector<64x128xf32>
    %cst_57 = arith.constant 0.000000e+00 : f32
    %61 = vector.broadcast %cst_57 : f32 to vector<64x128xf32>
    %62 = arith.maximumf %60, %61 : vector<64x128xf32>
    %c0_58 = arith.constant 0 : index
    %c0_59 = arith.constant 0 : index
    %63 = vector.load %arg13[%c0_58, %c0_59] : memref<64x128xf32, #tpu.memory_space<vmem>>, vector<64x128xf32>
    %64 = arith.truncf %62 : vector<64x128xf32> to vector<64x128xbf16>
    %c0_60 = arith.constant 0 : index
    %c0_61 = arith.constant 0 : index
    %65 = vector.load %arg10[%c0_60, %c0_61] : memref<128x128xbf16, #tpu.memory_space<vmem>>, vector<128x128xbf16>
    %cst_62 = arith.constant dense<0.000000e+00> : vector<64x128xf32>
    %66 = tpu.matmul %64, %65, %cst_62 {dimension_numbers = #tpu.dot_dimension_numbers<[1], [0], [0], [1], [0, 0, 1, 1], [], []>} : vector<64x128xbf16>, vector<128x128xbf16>, vector<64x128xf32> -> vector<64x128xf32>
    %67 = arith.addf %63, %66 : vector<64x128xf32>
    %c0_63 = arith.constant 0 : index
    %c0_64 = arith.constant 0 : index
    %68 = vector.load %arg13[%c0_63, %c0_64] : memref<64x128xf32, #tpu.memory_space<vmem>>, vector<64x128xf32>
    tpu.vector_store %arg13[%c0_63, %c0_64], %67 {strides = array<i32>} : memref<64x128xf32, #tpu.memory_space<vmem>>, vector<64x128xf32>,
    %c0_i32_65 = arith.constant 0 : i32
    %69 = arith.cmpi eq, %arg1, %c0_i32_65 : i32
    %70 = arith.extui %69 : i1 to i32
    %c0_i32_66 = arith.constant 0 : i32
    %71 = arith.cmpi ne, %70, %c0_i32_66 : i32
    scf.if %71 {
      %c0_67 = arith.constant 0 : index
      %c0_68 = arith.constant 0 : index
      %72 = vector.load %arg13[%c0_67, %c0_68] : memref<64x128xf32, #tpu.memory_space<vmem>>, vector<64x128xf32>
      %c0_69 = arith.constant 0 : index
      %c0_70 = arith.constant 0 : index
      %73 = vector.load %arg11[%c0_69, %c0_70] : memref<1x128xf32, #tpu.memory_space<vmem>>, vector<1x128xf32>
      %74 = vector.broadcast %73 : vector<1x128xf32> to vector<64x128xf32>
      %75 = arith.addf %72, %74 : vector<64x128xf32>
      %76 = arith.truncf %75 : vector<64x128xf32> to vector<64x128xbf16>
      %c0_71 = arith.constant 0 : index
      %c0_72 = arith.constant 0 : index
      %c0_73 = arith.constant 0 : index
      %77 = vector.load %arg12[%c0_71, %c0_72, %c0_73] : memref<1x64x128xbf16, #tpu.memory_space<vmem>>, vector<1x64x128xbf16>
      %78 = vector.shape_cast %77 : vector<1x64x128xbf16> to vector<64x128xbf16>
      %79 = vector.shape_cast %76 : vector<64x128xbf16> to vector<1x64x128xbf16>
      tpu.vector_store %arg12[%c0_71, %c0_72, %c0_73], %79 {strides = array<i32>} : memref<1x64x128xbf16, #tpu.memory_space<vmem>>, vector<1x64x128xbf16>,
    } else {
    }
    return
  }
  func.func @transform_0(%arg0: i32, %arg1: i32) -> (i32, i32, i32) {
    %c0_i32 = arith.constant 0 : i32
    %c0_i32_0 = arith.constant 0 : i32
    %c0_i32_1 = arith.constant 0 : i32
    return %arg0, %c0_i32, %c0_i32_0 : i32, i32, i32
  }
  func.func @transform_1(%arg0: i32, %arg1: i32) -> (i32, i32, i32) {
    %c0_i32 = arith.constant 0 : i32
    %c0_i32_0 = arith.constant 0 : i32
    %c0_i32_1 = arith.constant 0 : i32
    return %arg0, %c0_i32, %c0_i32_0 : i32, i32, i32
  }
  func.func @transform_2(%arg0: i32, %arg1: i32) -> (i32, i32, i32) {
    %c0_i32 = arith.constant 0 : i32
    %c0_i32_0 = arith.constant 0 : i32
    %c0_i32_1 = arith.constant 0 : i32
    return %arg0, %c0_i32, %c0_i32_0 : i32, i32, i32
  }
  func.func @transform_3(%arg0: i32, %arg1: i32) -> (i32, i32, i32) {
    %c0_i32 = arith.constant 0 : i32
    %c0_i32_0 = arith.constant 0 : i32
    %c0_i32_1 = arith.constant 0 : i32
    return %arg0, %c0_i32, %c0_i32_0 : i32, i32, i32
  }
  func.func @transform_4(%arg0: i32, %arg1: i32) -> (i32, i32, i32) {
    %c0_i32 = arith.constant 0 : i32
    %c0_i32_0 = arith.constant 0 : i32
    %c0_i32_1 = arith.constant 0 : i32
    return %arg0, %c0_i32, %c0_i32_0 : i32, i32, i32
  }
  func.func @transform_5(%arg0: i32, %arg1: i32) -> (i32, i32, i32) {
    %c0_i32 = arith.constant 0 : i32
    %c0_i32_0 = arith.constant 0 : i32
    %c0_i32_1 = arith.constant 0 : i32
    return %arg0, %c0_i32, %c0_i32_0 : i32, i32, i32
  }
  func.func @transform_6(%arg0: i32, %arg1: i32) -> (i32, i32, i32) {
    %c0_i32 = arith.constant 0 : i32
    %c0_i32_0 = arith.constant 0 : i32
    %c0_i32_1 = arith.constant 0 : i32
    return %c0_i32, %c0_i32_0, %arg1 : i32, i32, i32
  }
  func.func @transform_7(%arg0: i32, %arg1: i32) -> (i32, i32) {
    %c0_i32 = arith.constant 0 : i32
    %c0_i32_0 = arith.constant 0 : i32
    return %c0_i32, %arg1 : i32, i32
  }
  func.func @transform_8(%arg0: i32, %arg1: i32) -> (i32, i32) {
    %c0_i32 = arith.constant 0 : i32
    %c0_i32_0 = arith.constant 0 : i32
    return %arg1, %c0_i32 : i32, i32
  }
  func.func @transform_9(%arg0: i32, %arg1: i32) -> (i32, i32) {
    %c0_i32 = arith.constant 0 : i32
    %c0_i32_0 = arith.constant 0 : i32
    %c0_i32_1 = arith.constant 0 : i32
    return %c0_i32, %c0_i32_0 : i32, i32
  }
  func.func @transform_10(%arg0: i32, %arg1: i32) -> (i32, i32, i32) {
    %c0_i32 = arith.constant 0 : i32
    %c0_i32_0 = arith.constant 0 : i32
    %c0_i32_1 = arith.constant 0 : i32
    return %arg0, %c0_i32, %c0_i32_0 : i32, i32, i32
  }
}

module attributes {stable_mosaic.version = 11 : i64} {
  func.func @_upsample_kernel(%arg0: i32, %arg1: i32, %arg2: memref<1x64x128xbf16, #tpu.memory_space<vmem>>, %arg3: memref<256x64xbf16, #tpu.memory_space<vmem>>, %arg4: memref<1x256x128xf32, #tpu.memory_space<vmem>>) attributes {dimension_semantics = [#tpu.dimension_semantics<parallel>, #tpu.dimension_semantics<parallel>], iteration_bounds = array<i64: 2, 1>, scalar_prefetch = 0 : i64, scratch_operands = 0 : i64, tpu.core_type = #tpu.core_type<tc>, window_params = [{transform_indices = @transform_0, window_bounds = array<i64: 1, 64, 128>}, {transform_indices = @transform_1, window_bounds = array<i64: 256, 64>}, {transform_indices = @transform_2, window_bounds = array<i64: 1, 256, 128>}]} {
    %c0 = arith.constant 0 : index
    %c0_0 = arith.constant 0 : index
    %0 = vector.load %arg3[%c0, %c0_0] : memref<256x64xbf16, #tpu.memory_space<vmem>>, vector<256x64xbf16>
    %c0_1 = arith.constant 0 : index
    %c0_2 = arith.constant 0 : index
    %c0_3 = arith.constant 0 : index
    %1 = vector.load %arg2[%c0_1, %c0_2, %c0_3] : memref<1x64x128xbf16, #tpu.memory_space<vmem>>, vector<1x64x128xbf16>
    %2 = vector.shape_cast %1 : vector<1x64x128xbf16> to vector<64x128xbf16>
    %cst = arith.constant dense<0.000000e+00> : vector<256x128xf32>
    %3 = tpu.matmul %0, %2, %cst {dimension_numbers = #tpu.dot_dimension_numbers<[1], [0], [0], [1], [0, 0, 1, 1], [], []>} : vector<256x64xbf16>, vector<64x128xbf16>, vector<256x128xf32> -> vector<256x128xf32>
    %c0_4 = arith.constant 0 : index
    %c0_5 = arith.constant 0 : index
    %c0_6 = arith.constant 0 : index
    %4 = vector.load %arg4[%c0_4, %c0_5, %c0_6] : memref<1x256x128xf32, #tpu.memory_space<vmem>>, vector<1x256x128xf32>
    %5 = vector.shape_cast %4 : vector<1x256x128xf32> to vector<256x128xf32>
    %6 = vector.shape_cast %3 : vector<256x128xf32> to vector<1x256x128xf32>
    tpu.vector_store %arg4[%c0_4, %c0_5, %c0_6], %6 {strides = array<i32>} : memref<1x256x128xf32, #tpu.memory_space<vmem>>, vector<1x256x128xf32>,
    return
  }
  func.func @transform_0(%arg0: i32, %arg1: i32) -> (i32, i32, i32) {
    %c0_i32 = arith.constant 0 : i32
    %c0_i32_0 = arith.constant 0 : i32
    %c0_i32_1 = arith.constant 0 : i32
    return %arg0, %c0_i32, %c0_i32_0 : i32, i32, i32
  }
  func.func @transform_1(%arg0: i32, %arg1: i32) -> (i32, i32) {
    %c0_i32 = arith.constant 0 : i32
    %c0_i32_0 = arith.constant 0 : i32
    return %arg1, %c0_i32 : i32, i32
  }
  func.func @transform_2(%arg0: i32, %arg1: i32) -> (i32, i32, i32) {
    %c0_i32 = arith.constant 0 : i32
    %c0_i32_0 = arith.constant 0 : i32
    return %arg0, %arg1, %c0_i32 : i32, i32, i32
  }
}

</mosaic_0001>

<bundles_post_ra>
// kernel: fcn32_forward.3
= control target key start
LH: loop header
LB: loop body
LE: loop exit
PB: predicated region body
PF: predicated region fallthrough
CT: control target
= control target key end

     0   :  { %s873_s9 = smov 0   ;;  %s875_s10 = smov 0   ;;  %s1008_s0 = inlined_call_operand.vmem [shape: bf16[2,64,128], index: 0, kind: input, shape index: {}]   ;;  %s1009_s1 = inlined_call_operand.vmem [shape: bf16[256,64], index: 1, kind: input, shape index: {}]   ;;  %s1010_s2 = inlined_call_operand.vmem [shape: f32[2,256,128], index: 2, kind: output, shape index: {}]  }
   0x1   :  { %s877_s11 = smov 0  }
   0x2 LB: > { %s24_s12 = sadd.s32 1, %s852_s10  ;;  %p677_p0 = scmp.ge.s32.totalorder %s856_s11, 1  ;;  %s856_s11 = sphi %s877_s11, %s12_s11   ;;  %s852_s10 = sphi %s875_s10, %s1012_s10   ;;  %s848_s9 = sphi %s873_s9, %s1011_s9  }
   0x3   : > { %p26_p1 = scmp.ge.s32.totalorder %s24_s12, 2  ;;  %p137_p2 = scmp.lt.s32.totalorder %s856_s11, 3 }
   0x5   : > { %s1014_s12 = smov (%p26_p1, %s24_s12), 0  ;;  %p138_p3 = pnand %p677_p0, %p137_p2 }
   0x6   : > { %p168_p4 = scmp.lt.s32.totalorder (!%p138_p3), %s848_s9, 1  ;;  %v818_v0 = vld [vmem:[%s1009_s1] sm:$0xff] (!%p138_p3)   ;;  %vm334_vm0 = vcmask (!%p138_p3), 523264   ;;  %v820_v6 = vld [vmem:[%s1009_s1 + $0x8] sm:$0xff] (!%p138_p3)   ;;  %v822_v8 = vld [vmem:[%s1009_s1 + $0x10] sm:$0xff] (!%p138_p3)  }
   0x7   : > { %141 = sbr.rel (%p138_p3) target bundleno = 274 (0x112), region = 28  ;;  %v819_v1 = vld [vmem:[%s1009_s1 + $0x40] sm:$0xff] (!%p138_p3)   ;;  %750 = vmatprep.mubr.msk.bf16.mxu0 (!%p138_p3), %vm334_vm0, %v818_v0  ;;  %v821_v7 = vld [vmem:[%s1009_s1 + $0x48] sm:$0xff] (!%p138_p3)   ;;  %v823_v9 = vld [vmem:[%s1009_s1 + $0x50] sm:$0xff] (!%p138_p3)  }
   0x8   : > { %766 = vmatprep.mubr.msk.bf16.mxu1 (!%p138_p3), %vm334_vm0, %v819_v1  ;;  %v824_v10 = vld [vmem:[%s1009_s1 + $0x18] sm:$0xff] (!%p138_p3)   ;;  %v826_v12 = vld [vmem:[%s1009_s1 + $0x20] sm:$0xff] (!%p138_p3)   ;;  %v828_v14 = vld [vmem:[%s1009_s1 + $0x28] sm:$0xff] (!%p138_p3)  }
   0x9   : > { %v825_v11 = vld [vmem:[%s1009_s1 + $0x58] sm:$0xff] (!%p138_p3)   ;;  %v827_v13 = vld [vmem:[%s1009_s1 + $0x60] sm:$0xff] (!%p138_p3)   ;;  %v829_v15 = vld [vmem:[%s1009_s1 + $0x68] sm:$0xff] (!%p138_p3)  }
   0xa   : > { %v830_v16 = vld [vmem:[%s1009_s1 + $0x30] sm:$0xff] (!%p138_p3)   ;;  %v832_v18 = vld [vmem:[%s1009_s1 + $0x38] sm:$0xff] (!%p138_p3)  }
   0xb   : > { %v831_v17 = vld [vmem:[%s1009_s1 + $0x70] sm:$0xff] (!%p138_p3)   ;;  %v833_v19 = vld [vmem:[%s1009_s1 + $0x78] sm:$0xff] (!%p138_p3)  }
   0xe   : > { %s1016_s9 = smov (!%p168_p4, %s848_s9), 1 }
   0xf   : > { %s720_s17 = sshll.u32 %s1016_s9, 5  ;;  %s721_s25 = sshll.u32 %s1016_s9, 8 }
  0x10   : > { %s172_s20 = scalar_lea.vmem %s1008_s0, %s720_s17  ;;  %s965_s28 = scalar_lea.vmem %s1010_s2, %s721_s25 }
  0x11   : > { %v814_v2 = vld [vmem:[%s172_s20] sm:$0xff]   ;;  %v815_v3 = vld [vmem:[%s172_s20 + $0x8] sm:$0xff]   ;;  %v816_v4 = vld [vmem:[%s172_s20 + $0x10] sm:$0xff]  }
  0x12   : > { %742 = vmatprep.subr.bf16.mxu0 %v814_v2  ;;  %782 = vmatprep.subr.bf16.mxu1 %v814_v2  ;;  %v817_v5 = vld [vmem:[%s172_s20 + $0x18] sm:$0xff]  }
  0x13   : > { %743 = vmatpush3.bf16.msra.mxu0 %v814_v2  ;;  %786 = vmatpush3.bf16.msra.mxu1 %v814_v2 }
  0x14   : > { %744 = vmatprep.subr.bf16.mxu0 %v815_v3  ;;  %783 = vmatprep.subr.bf16.mxu1 %v815_v3 }
  0x17   : > { %745 = vmatpush3.bf16.msra.mxu0 %v815_v3  ;;  %787 = vmatpush3.bf16.msra.mxu1 %v815_v3 }
  0x18   : > { %746 = vmatprep.subr.bf16.mxu0 %v816_v4  ;;  %784 = vmatprep.subr.bf16.mxu1 %v816_v4 }
  0x1b   : > { %747 = vmatpush3.bf16.msra.mxu0 %v816_v4  ;;  %788 = vmatpush3.bf16.msra.mxu1 %v816_v4 }
  0x1c   : > { %748 = vmatprep.subr.bf16.mxu0 %v817_v5  ;;  %785 = vmatprep.subr.bf16.mxu1 %v817_v5 }
  0x1f   : > { %749 = vmatpush3.bf16.msra.mxu0 %v817_v5  ;;  %789 = vmatpush3.bf16.msra.mxu1 %v817_v5 }
  0x22   : > { %751 = vmatmul.mubr.msk.bf16.vlgmr.msra.gmra.mrb[0].mxu0 %vm334_vm0, %v820_v6  ;;  %767 = vmatmul.mubr.msk.bf16.vlgmr.msra.gmra.mrb[0].mxu1 %vm334_vm0, %v821_v7 }
  0x23   : > { %754 = vmatprep.mubr.msk.bf16.mxu0 %vm334_vm0, %v822_v8  ;;  %770 = vmatprep.mubr.msk.bf16.mxu1 %vm334_vm0, %v823_v9 }
  0x2a   : > { %755 = vmatmul.mubr.msk.bf16.gmra.mrb[4].mxu0 %vm334_vm0, %v824_v10  ;;  %771 = vmatmul.mubr.msk.bf16.gmra.mrb[4].mxu1 %vm334_vm0, %v825_v11 }
  0x2b   : > { %758 = vmatprep.mubr.msk.bf16.mxu0 %vm334_vm0, %v826_v12  ;;  %774 = vmatprep.mubr.msk.bf16.mxu1 %vm334_vm0, %v827_v13 }
  0x32   : > { %759 = vmatmul.mubr.msk.bf16.gmra.mrb[8].mxu0 %vm334_vm0, %v828_v14  ;;  %775 = vmatmul.mubr.msk.bf16.gmra.mrb[8].mxu1 %vm334_vm0, %v829_v15 }
  0x33   : > { %762 = vmatprep.mubr.msk.bf16.mxu0 %vm334_vm0, %v830_v16  ;;  %778 = vmatprep.mubr.msk.bf16.mxu1 %vm334_vm0, %v831_v17 }
  0x3a   : > { %763 = vmatmul.mubr.msk.bf16.gmra.mrb[12].mxu0 %vm334_vm0, %v832_v18  ;;  %779 = vmatmul.mubr.msk.bf16.gmra.mrb[12].mxu1 %vm334_vm0, %v833_v19 }
  0xf5   : > { %v752_v20 = vpop.f32.mrb[0].mxu0  ;;  %v768_v21 = vpop.f32.mrb[0].mxu1 }
  0xf6   : > { %546 = vst [vmem:[%s965_s28 + $0x10] sm:$0xff] %v752_v20  ;;  %562 = vst [vmem:[%s965_s28 + $0x90] sm:$0xff] %v768_v21  ;;  %v417_v22 = vpop.f32.mrb[1].mxu0  ;;  %v481_v23 = vpop.f32.mrb[1].mxu1 }
  0xf7   : > { %544 = vst [vmem:[%s965_s28] sm:$0xff] %v417_v22  ;;  %560 = vst [vmem:[%s965_s28 + $0x80] sm:$0xff] %v481_v23  ;;  %v753_v24 = vpop.f32.mrb[2].mxu0  ;;  %v769_v25 = vpop.f32.mrb[2].mxu1 }
  0xf8   : > { %547 = vst [vmem:[%s965_s28 + $0x18] sm:$0xff] %v753_v24  ;;  %563 = vst [vmem:[%s965_s28 + $0x98] sm:$0xff] %v769_v25  ;;  %v420_v26 = vpop.f32.mrb[3].mxu0  ;;  %v484_v27 = vpop.f32.mrb[3].mxu1 }
  0xf9   : > { %545 = vst [vmem:[%s965_s28 + $0x8] sm:$0xff] %v420_v26  ;;  %561 = vst [vmem:[%s965_s28 + $0x88] sm:$0xff] %v484_v27 }
  0xfd   : > { %v756_v28 = vpop.f32.mrb[4].mxu0  ;;  %v772_v29 = vpop.f32.mrb[4].mxu1 }
  0xfe   : > { %550 = vst [vmem:[%s965_s28 + $0x30] sm:$0xff] %v756_v28  ;;  %566 = vst [vmem:[%s965_s28 + $0xb0] sm:$0xff] %v772_v29  ;;  %v433_v30 = vpop.f32.mrb[5].mxu0  ;;  %v497_v31 = vpop.f32.mrb[5].mxu1 }
  0xff   : > { %548 = vst [vmem:[%s965_s28 + $0x20] sm:$0xff] %v433_v30  ;;  %564 = vst [vmem:[%s965_s28 + $0xa0] sm:$0xff] %v497_v31  ;;  %v757_v32 = vpop.f32.mrb[6].mxu0  ;;  %v773_v33 = vpop.f32.mrb[6].mxu1 }
 0x100   : > { %551 = vst [vmem:[%s965_s28 + $0x38] sm:$0xff] %v757_v32  ;;  %567 = vst [vmem:[%s965_s28 + $0xb8] sm:$0xff] %v773_v33  ;;  %v436_v34 = vpop.f32.mrb[7].mxu0  ;;  %v500_v35 = vpop.f32.mrb[7].mxu1 }
 0x101   : > { %549 = vst [vmem:[%s965_s28 + $0x28] sm:$0xff] %v436_v34  ;;  %565 = vst [vmem:[%s965_s28 + $0xa8] sm:$0xff] %v500_v35 }
 0x105   : > { %v760_v36 = vpop.f32.mrb[8].mxu0  ;;  %v776_v37 = vpop.f32.mrb[8].mxu1 }
 0x106   : > { %554 = vst [vmem:[%s965_s28 + $0x50] sm:$0xff] %v760_v36  ;;  %570 = vst [vmem:[%s965_s28 + $0xd0] sm:$0xff] %v776_v37  ;;  %v449_v38 = vpop.f32.mrb[9].mxu0  ;;  %v513_v39 = vpop.f32.mrb[9].mxu1 }
 0x107   : > { %552 = vst [vmem:[%s965_s28 + $0x40] sm:$0xff] %v449_v38  ;;  %568 = vst [vmem:[%s965_s28 + $0xc0] sm:$0xff] %v513_v39  ;;  %v761_v40 = vpop.f32.mrb[10].mxu0  ;;  %v777_v41 = vpop.f32.mrb[10].mxu1 }
 0x108   : > { %555 = vst [vmem:[%s965_s28 + $0x58] sm:$0xff] %v761_v40  ;;  %571 = vst [vmem:[%s965_s28 + $0xd8] sm:$0xff] %v777_v41  ;;  %v452_v42 = vpop.f32.mrb[11].mxu0  ;;  %v516_v43 = vpop.f32.mrb[11].mxu1 }
 0x109   : > { %553 = vst [vmem:[%s965_s28 + $0x48] sm:$0xff] %v452_v42  ;;  %569 = vst [vmem:[%s965_s28 + $0xc8] sm:$0xff] %v516_v43 }
 0x10d   : > { %v764_v44 = vpop.f32.mrb[12].mxu0  ;;  %v780_v45 = vpop.f32.mrb[12].mxu1 }
 0x10e   : > { %558 = vst [vmem:[%s965_s28 + $0x70] sm:$0xff] %v764_v44  ;;  %574 = vst [vmem:[%s965_s28 + $0xf0] sm:$0xff] %v780_v45  ;;  %v465_v46 = vpop.f32.mrb[13].mxu0  ;;  %v529_v47 = vpop.f32.mrb[13].mxu1 }
 0x10f   : > { %556 = vst [vmem:[%s965_s28 + $0x60] sm:$0xff] %v465_v46  ;;  %572 = vst [vmem:[%s965_s28 + $0xe0] sm:$0xff] %v529_v47  ;;  %v765_v48 = vpop.f32.mrb[14].mxu0  ;;  %v781_v49 = vpop.f32.mrb[14].mxu1 }
 0x110   : > { %559 = vst [vmem:[%s965_s28 + $0x78] sm:$0xff] %v765_v48  ;;  %575 = vst [vmem:[%s965_s28 + $0xf8] sm:$0xff] %v781_v49  ;;  %v468_v50 = vpop.f32.mrb[15].mxu0  ;;  %v532_v51 = vpop.f32.mrb[15].mxu1 }
 0x111   : > { %557 = vst [vmem:[%s965_s28 + $0x68] sm:$0xff] %v468_v50  ;;  %573 = vst [vmem:[%s965_s28 + $0xe8] sm:$0xff] %v532_v51 }
 0x112 PF: > { %s12_s11 = sadd.s32 1, %s856_s11   ;;  %s1011_s9 = smov %s852_s10 }
 0x113   : > { %p9_p5 = scmp.ge.s32.totalorder %s12_s11, 4   ;;  %s1012_s10 = smov %s1014_s12 }
 0x115   :  { %11 = sbr.rel (!%p9_p5) target bundleno = 2 (0x2), region = 61 }

// kernel: fcn32_forward.2
= control target key start
LH: loop header
LB: loop body
LE: loop exit
PB: predicated region body
PF: predicated region fallthrough
CT: control target
= control target key end

     0   :  { %s2537_s13 = smov 0   ;;  %s2539_s14 = smov 0   ;;  %s2750_s0 = inlined_call_operand.vmem [shape: bf16[2,72,4], index: 0, kind: input, shape index: {}]   ;;  %s2751_s1 = inlined_call_operand.vmem [shape: bf16[2,72,4], index: 1, kind: input, shape index: {}]   ;;  %s2752_s2 = inlined_call_operand.vmem [shape: bf16[2,72,4], index: 2, kind: input, shape index: {}]   ;;  %s2753_s3 = inlined_call_operand.vmem [shape: bf16[2,72,4], index: 3, kind: input, shape index: {}]   ;;  %s2754_s4 = inlined_call_operand.vmem [shape: bf16[2,72,4], index: 4, kind: input, shape index: {}]   ;;  %s2755_s5 = inlined_call_operand.vmem [shape: bf16[2,72,4], index: 5, kind: input, shape index: {}]   ;;  %s2756_s6 = inlined_call_operand.vmem [shape: bf16[9,4,128], index: 6, kind: input, shape index: {}]   ;;  %s2757_s7 = inlined_call_operand.vmem [shape: f32[1,128], index: 7, kind: input, shape index: {}]   ;;  %s2758_s8 = inlined_call_operand.vmem [shape: bf16[128,128], index: 8, kind: input, shape index: {}]   ;;  %s2759_s9 = inlined_call_operand.vmem [shape: f32[1,128], index: 9, kind: input, shape index: {}]   ;;  %s2760_s10 = inlined_call_operand.vmem [shape: bf16[2,64,128], index: 10, kind: output, shape index: {}]  }
   0x1   :  { %s2541_s15 = smov 0  }
   0x2 LB: > { %s32_s16 = sadd.s32 1, %s2476_s14  ;;  %p2004_p0 = scmp.ge.s32.totalorder %s2480_s15, 1  ;;  %s2480_s15 = sphi %s2541_s15, %s20_s15   ;;  %s2476_s14 = sphi %s2539_s14, %s2762_s14   ;;  %s2472_s13 = sphi %s2537_s13, %s2761_s13  }
   0x3   : > { %p34_p1 = scmp.ge.s32.totalorder %s32_s16, 2  ;;  %p402_p2 = scmp.lt.s32.totalorder %s2480_s15, 3 }
   0x5   : > { %s2764_s16 = smov (%p34_p1, %s32_s16), 0  ;;  %p403_p3 = pnand %p2004_p0, %p402_p2 }
   0x6   : > { %vm590_vm0 = vcmask (!%p403_p3), 1041408   ;;  %v2039_v0 = vld [vmem:[%s2756_s6 + $0x6] sm:$0x3] (!%p403_p3)  ;;  %p477_p4 = scmp.lt.s32.totalorder (!%p403_p3), %s2472_s13, 1  ;;  %v2048_v2 = vld [vmem:[%s2756_s6 + $0x8] sm:$0x3] (!%p403_p3) }
   0x7   : > { %406 = sbr.rel (%p403_p3) target bundleno = 553 (0x229), region = 60  ;;  %2383 = vmatprep.subr.msk.bf16.mxu0 (!%p403_p3), %vm590_vm0, %v2039_v0  ;;  %v920_v1 = vsel (!%p403_p3), %vm590_vm0, %v2039_v0, 0  ;;  %v2013_v3 = vld [vmem:[%s2756_s6 + $0x2] sm:$0x3] (!%p403_p3)  ;;  %v546_v5 = vld [vmem:[%s2756_s6] sm:$0x3] (!%p403_p3) }
   0x8   : > { %2233 = vmatpush3.bf16.msra.mxu0 (!%p403_p3), %v920_v1  ;;  %2380 = vmatprep.subr.msk.bf16.mxu1 (!%p403_p3), %vm590_vm0, %v2013_v3  ;;  %v592_v4 = vsel (!%p403_p3), %vm590_vm0, %v2013_v3, 0  ;;  %vm577_vm1 = vcmask (!%p403_p3), 31744   ;;  %v2057_v8 = vld [vmem:[%s2756_s6 + $0xa] sm:$0x3] (!%p403_p3)  ;;  %v1038_v10 = vsel (!%p403_p3), %vm590_vm0, %v2048_v2, 0  ;;  %v692_v13 = vsel (!%p403_p3), %vm590_vm0, %v546_v5, 0 }
   0x9   : > { %2384 = vmatprep.subr.msk.bf16.mxu0 (!%p403_p3), %vm590_vm0, %v2048_v2  ;;  %2203 = vmatpush3.bf16.msra.mxu1 (!%p403_p3), %v592_v4  ;;  %v2030_v14 = vld [vmem:[%s2756_s6 + $0x4] sm:$0x3] (!%p403_p3)  ;;  %v1156_v21 = vsel (!%p403_p3), %vm590_vm0, %v2057_v8, 0  ;;  %v2066_v23 = vld [vmem:[%s2756_s6 + $0xc] sm:$0x3] (!%p403_p3)  ;;  %v2452_v56 = vld [vmem:[%s2758_s8 + $0x10] sm:$0xff] (!%p403_p3)  }
   0xa   : > { %2381 = vmatprep.subr.msk.bf16.mxu1 (!%p403_p3), %vm590_vm0, %v546_v5  ;;  %v802_v26 = vsel (!%p403_p3), %vm590_vm0, %v2030_v14, 0  ;;  %v2075_v33 = vld [vmem:[%s2756_s6 + $0xe] sm:$0x3] (!%p403_p3)  ;;  %v1274_v34 = vsel (!%p403_p3), %vm590_vm0, %v2066_v23, 0  ;;  %v2084_v43 = vld [vmem:[%s2756_s6 + $0x10] sm:$0x3] (!%p403_p3) }
   0xb   : > { %v1392_v42 = vsel (!%p403_p3), %vm590_vm0, %v2075_v33, 0  ;;  %v1510_v48 = vsel (!%p403_p3), %vm590_vm0, %v2084_v43, 0  ;;  %v2450_v54 = vld [vmem:[%s2758_s8] sm:$0xff] (!%p403_p3)   ;;  %v2451_v55 = vld [vmem:[%s2758_s8 + $0x8] sm:$0xff] (!%p403_p3)   ;;  %v2453_v57 = vld [vmem:[%s2758_s8 + $0x18] sm:$0xff] (!%p403_p3)  }
   0xc   : > { %v2454_v58 = vld [vmem:[%s2758_s8 + $0x20] sm:$0xff] (!%p403_p3)   ;;  %v2455_v59 = vld [vmem:[%s2758_s8 + $0x28] sm:$0xff] (!%p403_p3)   ;;  %v2456_v60 = vld [vmem:[%s2758_s8 + $0x30] sm:$0xff] (!%p403_p3)  }
   0xd   : > { %v2457_v61 = vld [vmem:[%s2758_s8 + $0x38] sm:$0xff] (!%p403_p3)  }
   0xe   : > { %s2766_s13 = smov (!%p477_p4, %s2472_s13), 1 }
   0xf   : > { %s2575_s25 = smul.u32 36, %s2766_s13  ;;  %s2113_s27 = sshll.u32 %s2766_s13, 5 }
  0x11   : > { %s2582_s28 = scalar_lea.vmem %s2751_s1, %s2575_s25  ;;  %s496_s11 = scalar_lea.vmem %s2753_s3, %s2575_s25 }
  0x12   : > { %v2418_v6 = vld [vmem:[%s2582_s28] sm:$0xff]   ;;  %v2415_v9 = vld [vmem:[%s496_s11 + $0x8] sm:$0xff]   ;;  %v2416_v11 = vld [vmem:[%s496_s11 + $0x10] sm:$0xff]   ;;  %s2602_s20 = scalar_lea.vmem %s2754_s4, %s2575_s25  ;;  %s2615_s26 = scalar_lea.vmem %s2750_s0, %s2575_s25 }
  0x13   : > { %v2414_v7 = vld [vmem:[%s496_s11] sm:$0xff]   ;;  %2204 = vmatprep.mubr.msk.bf16.mxu1 %vm577_vm1, %v2418_v6  ;;  %v2419_v12 = vld [vmem:[%s2582_s28 + $0x8] sm:$0xff]   ;;  %v2417_v15 = vld [vmem:[%s496_s11 + $0x18] sm:$0xff]   ;;  %s2628_s30 = scalar_lea.vmem %s2755_s5, %s2575_s25  ;;  %s2642_s19 = scalar_lea.vmem %s2752_s2, %s2575_s25 }
  0x14   : > { %2234 = vmatprep.mubr.msk.bf16.mxu0 %vm577_vm1, %v2414_v7  ;;  %2205 = vmatmul.mubr.msk.bf16.vlgmr.msra.gmra.mrb[0].mxu1 %vm577_vm1, %v2419_v12  ;;  %v2422_v16 = vld [vmem:[%s2582_s28 + $0x10] sm:$0xff]   ;;  %v2420_v17 = vld [vmem:[%s2602_s20] sm:$0xff]   ;;  %v2423_v18 = vld [vmem:[%s2582_s28 + $0x18] sm:$0xff]   ;;  %s524_s11 = scalar_lea.vmem %s2760_s10, %s2113_s27 }
  0x15   : > { %2235 = vmatmul.mubr.msk.bf16.vlgmr.msra.gmra.mrb[0].mxu0 %vm577_vm1, %v2415_v9  ;;  %2213 = vmatpush3.bf16.msra.mxu1 %v692_v13  ;;  %v2426_v19 = vld [vmem:[%s2615_s26] sm:$0xff]   ;;  %v2421_v20 = vld [vmem:[%s2602_s20 + $0x8] sm:$0xff]   ;;  %v2424_v22 = vld [vmem:[%s2602_s20 + $0x10] sm:$0xff]  }
  0x16   : > { %2243 = vmatpush3.bf16.msra.mxu0 %v1038_v10  ;;  %2238 = vmatprep.mubr.msk.bf16.mxu0 %vm577_vm1, %v2416_v11  ;;  %v2427_v24 = vld [vmem:[%s2615_s26 + $0x8] sm:$0xff]   ;;  %v2430_v25 = vld [vmem:[%s2615_s26 + $0x10] sm:$0xff]   ;;  %v2425_v27 = vld [vmem:[%s2602_s20 + $0x18] sm:$0xff]  }
  0x17   : > { %2385 = vmatprep.subr.msk.bf16.mxu0 %vm590_vm0, %v2057_v8  ;;  %2382 = vmatprep.subr.msk.bf16.mxu1 %vm590_vm0, %v2030_v14  ;;  %v2428_v28 = vld [vmem:[%s2628_s30] sm:$0xff]   ;;  %v2431_v29 = vld [vmem:[%s2615_s26 + $0x18] sm:$0xff]   ;;  %v2429_v31 = vld [vmem:[%s2628_s30 + $0x8] sm:$0xff]  }
  0x18   : > { %2208 = vmatprep.mubr.msk.bf16.mxu1 %vm577_vm1, %v2422_v16  ;;  %v2434_v30 = vld [vmem:[%s2642_s19] sm:$0xff]   ;;  %v2432_v32 = vld [vmem:[%s2628_s30 + $0x10] sm:$0xff]   ;;  %v2435_v35 = vld [vmem:[%s2642_s19 + $0x8] sm:$0xff]  }
  0x19   : > { %v2438_v36 = vld [vmem:[%s2642_s19 + $0x10] sm:$0xff]   ;;  %v2433_v37 = vld [vmem:[%s2628_s30 + $0x18] sm:$0xff]   ;;  %v2436_v38 = vld [vmem:[%s2615_s26 + $0x4] sm:$0xff]  }
  0x1a   : > { %v2439_v39 = vld [vmem:[%s2642_s19 + $0x18] sm:$0xff]   ;;  %v2437_v40 = vld [vmem:[%s2615_s26 + $0xc] sm:$0xff]   ;;  %v2442_v45 = vld [vmem:[%s2582_s28 + $0x4] sm:$0xff]  }
  0x1b   : > { %v2440_v41 = vld [vmem:[%s2615_s26 + $0x14] sm:$0xff]   ;;  %v2441_v44 = vld [vmem:[%s2615_s26 + $0x1c] sm:$0xff]   ;;  %v2443_v46 = vld [vmem:[%s2582_s28 + $0xc] sm:$0xff]  }
  0x1c   : > { %2209 = vmatmul.mubr.msk.bf16.gmra.mrb[4].mxu1 %vm577_vm1, %v2423_v18  ;;  %v2444_v47 = vld [vmem:[%s2582_s28 + $0x14] sm:$0xff]   ;;  %v2445_v49 = vld [vmem:[%s2582_s28 + $0x1c] sm:$0xff]   ;;  %v2446_v50 = vld [vmem:[%s2642_s19 + $0x4] sm:$0xff]  }
  0x1d   : > { %2239 = vmatmul.mubr.msk.bf16.gmra.mrb[4].mxu0 %vm577_vm1, %v2417_v15  ;;  %2214 = vmatprep.mubr.msk.bf16.mxu1 %vm577_vm1, %v2426_v19  ;;  %v2447_v51 = vld [vmem:[%s2642_s19 + $0xc] sm:$0xff]   ;;  %v2448_v52 = vld [vmem:[%s2642_s19 + $0x14] sm:$0xff]   ;;  %v2449_v53 = vld [vmem:[%s2642_s19 + $0x1c] sm:$0xff]  }
  0x1e   : > { %2244 = vmatprep.mubr.msk.bf16.mxu0 %vm577_vm1, %v2420_v17  ;;  %v2093_v7 = vld [vmem:[%s2757_s7] ss:$0 sm:$0xff] }
  0x24   : > { %2215 = vmatmul.mubr.msk.bf16.vlgmr.msra.gmra.mrb[0].mxu1 %vm577_vm1, %v2427_v24 }
  0x25   : > { %2245 = vmatmul.mubr.msk.bf16.vlgmr.msra.gmra.mrb[0].mxu0 %vm577_vm1, %v2421_v20  ;;  %2218 = vmatprep.mubr.msk.bf16.mxu1 %vm577_vm1, %v2430_v25 }
  0x26   : > { %2253 = vmatpush3.bf16.msra.mxu0 %v1156_v21  ;;  %2248 = vmatprep.mubr.msk.bf16.mxu0 %vm577_vm1, %v2424_v22 }
  0x27   : > { %2386 = vmatprep.subr.msk.bf16.mxu0 %vm590_vm0, %v2066_v23  ;;  %2223 = vmatpush3.bf16.msra.mxu1 %v802_v26 }
  0x28   : > { %2292 = vmatprep.subr.bf16.mxu1 %v2450_v54 }
  0x2c   : > { %2219 = vmatmul.mubr.msk.bf16.gmra.mrb[4].mxu1 %vm577_vm1, %v2431_v29 }
  0x2d   : > { %2249 = vmatmul.mubr.msk.bf16.gmra.mrb[4].mxu0 %vm577_vm1, %v2425_v27  ;;  %2224 = vmatprep.mubr.msk.bf16.mxu1 %vm577_vm1, %v2434_v30 }
  0x2e   : > { %2254 = vmatprep.mubr.msk.bf16.mxu0 %vm577_vm1, %v2428_v28 }
  0x34   : > { %2225 = vmatmul.mubr.msk.bf16.vlgmr.msra.gmra.mrb[0].mxu1 %vm577_vm1, %v2435_v35 }
  0x35   : > { %2255 = vmatmul.mubr.msk.bf16.vlgmr.msra.gmra.mrb[0].mxu0 %vm577_vm1, %v2429_v31  ;;  %2228 = vmatprep.mubr.msk.bf16.mxu1 %vm577_vm1, %v2438_v36 }
  0x36   : > { %2263 = vmatpush3.bf16.msra.mxu0 %v1274_v34  ;;  %2258 = vmatprep.mubr.msk.bf16.mxu0 %vm577_vm1, %v2432_v32 }
  0x37   : > { %2387 = vmatprep.subr.msk.bf16.mxu0 %vm590_vm0, %v2075_v33  ;;  %2293 = vmatpush3.bf16.msra.mxu1 %v2450_v54 }
  0x38   : > { %2294 = vmatprep.subr.bf16.mxu1 %v2451_v55 }
  0x3b   : > { %2295 = vmatpush3.bf16.msra.mxu1 %v2451_v55 }
  0x3c   : > { %2229 = vmatmul.mubr.msk.bf16.gmra.mrb[4].mxu1 %vm577_vm1, %v2439_v39  ;;  %2296 = vmatprep.subr.bf16.mxu1 %v2452_v56 }
  0x3d   : > { %2259 = vmatmul.mubr.msk.bf16.gmra.mrb[4].mxu0 %vm577_vm1, %v2433_v37 }
  0x3e   : > { %2264 = vmatprep.mubr.msk.bf16.mxu0 %vm577_vm1, %v2436_v38 }
  0x3f   : > { %2297 = vmatpush3.bf16.msra.mxu1 %v2452_v56 }
  0x40   : > { %2298 = vmatprep.subr.bf16.mxu1 %v2453_v57 }
  0x43   : > { %2299 = vmatpush3.bf16.msra.mxu1 %v2453_v57 }
  0x44   : > { %2300 = vmatprep.subr.bf16.mxu1 %v2454_v58 }
  0x45   : > { %2265 = vmatmul.mubr.msk.bf16.vlgmr.msra.gmra.mrb[0].mxu0 %vm577_vm1, %v2437_v40 }
  0x46   : > { %2273 = vmatpush3.bf16.msra.mxu0 %v1392_v42  ;;  %2268 = vmatprep.mubr.msk.bf16.mxu0 %vm577_vm1, %v2440_v41 }
  0x47   : > { %2388 = vmatprep.subr.msk.bf16.mxu0 %vm590_vm0, %v2084_v43  ;;  %2301 = vmatpush3.bf16.msra.mxu1 %v2454_v58 }
  0x48   : > { %2302 = vmatprep.subr.bf16.mxu1 %v2455_v59 }
  0x4b   : > { %2303 = vmatpush3.bf16.msra.mxu1 %v2455_v59 }
  0x4c   : > { %2304 = vmatprep.subr.bf16.mxu1 %v2456_v60 }
  0x4d   : > { %2269 = vmatmul.mubr.msk.bf16.gmra.mrb[4].mxu0 %vm577_vm1, %v2441_v44  ;;  %v2102_v44 = vld [vmem:[%s2759_s9] ss:$0 sm:$0xff] }
  0x4e   : > { %2274 = vmatprep.mubr.msk.bf16.mxu0 %vm577_vm1, %v2442_v45 }
  0x4f   : > { %2305 = vmatpush3.bf16.msra.mxu1 %v2456_v60 }
  0x50   : > { %2306 = vmatprep.subr.bf16.mxu1 %v2457_v61 }
  0x53   : > { %2307 = vmatpush3.bf16.msra.mxu1 %v2457_v61 }
  0x55   : > { %2275 = vmatmul.mubr.msk.bf16.vlgmr.msra.gmra.mrb[0].mxu0 %vm577_vm1, %v2443_v46 }
  0x56   : > { %2283 = vmatpush3.bf16.msra.mxu0 %v1510_v48  ;;  %2278 = vmatprep.mubr.msk.bf16.mxu0 %vm577_vm1, %v2444_v47 }
  0x5d   : > { %2279 = vmatmul.mubr.msk.bf16.gmra.mrb[4].mxu0 %vm577_vm1, %v2445_v49 }
  0x5e   : > { %2284 = vmatprep.mubr.msk.bf16.mxu0 %vm577_vm1, %v2446_v50 }
  0x65   : > { %2285 = vmatmul.mubr.msk.bf16.vlgmr.msra.gmra.mrb[0].mxu0 %vm577_vm1, %v2447_v51 }
  0x66   : > { %2288 = vmatprep.mubr.msk.bf16.mxu0 %vm577_vm1, %v2448_v52 }
  0x6d   : > { %2289 = vmatmul.mubr.msk.bf16.gmra.mrb[4].mxu0 %vm577_vm1, %v2449_v53 }
 0x107   : > { %v2226_v62 = vpop.f32.mrb[0].mxu1 }
 0x108   : > { %v838_v63 = vpop.f32.mrb[1].mxu1 }
 0x109   : > { %v2227_v0 = vpop.f32.mrb[2].mxu1 }
 0x10a   : > { %v841_v1 = vpop.f32.mrb[3].mxu1 }
 0x10f   : > { %v2230_v2 = vpop.f32.mrb[4].mxu1 }
 0x110   : > { %v854_v3 = vpop.f32.mrb[5].mxu1 }
 0x111   : > { %v2231_v4 = vpop.f32.mrb[6].mxu1 }
 0x112   : > { %v857_v5 = vpop.f32.mrb[7].mxu1 }
 0x138   : > { %v2286_v6 = vpop.f32.mrb[0].mxu0 }
 0x139   : > { %v2316_v8 = vadd.f32 %v2286_v6, %v2226_v62  ;;  %v1546_v9 = vpop.f32.mrb[1].mxu0 }
 0x13a   : > { %v2317_v10 = vadd.f32 %v1546_v9, %v838_v63  ;;  %v2287_v11 = vpop.f32.mrb[2].mxu0 }
 0x13b   : > { %v1594_v12 = vadd.f32 %v2316_v8, %v2093_v7  ;;  %v2318_v13 = vadd.f32 %v2287_v11, %v2227_v0  ;;  %v1549_v14 = vpop.f32.mrb[3].mxu0 }
 0x13c   : > { %v1592_v15 = vadd.f32 %v2317_v10, %v2093_v7  ;;  %v2319_v16 = vadd.f32 %v1549_v14, %v841_v1 }
 0x13d   : > { %v1595_v17 = vadd.f32 %v2318_v13, %v2093_v7  ;;  %v1602_v19 = vmax.f32 %v1594_v12, 0.0 }
 0x13e   : > { %v1593_v18 = vadd.f32 %v2319_v16, %v2093_v7  ;;  %v1600_v21 = vmax.f32 %v1592_v15, 0.0 }
 0x13f   : > { %v1603_v20 = vmax.f32 %v1595_v17, 0.0 }
 0x140   : > { %v1601_v22 = vmax.f32 %v1593_v18, 0.0  ;;  %v2290_v23 = vpop.f32.mrb[4].mxu0 }
 0x141   : > { %v1617_v24 = vpack.c.bf16 %v1603_v20, %v1602_v19  ;;  %v2320_v25 = vadd.f32 %v2290_v23, %v2230_v2  ;;  %v1562_v26 = vpop.f32.mrb[5].mxu0 }
 0x142   : > { %v2321_v27 = vadd.f32 %v1562_v26, %v854_v3  ;;  %v2291_v28 = vpop.f32.mrb[6].mxu0  ;;  %v1616_v29 = vpack.c.bf16 %v1601_v22, %v1600_v21 }
 0x143   : > { %v1598_v30 = vadd.f32 %v2320_v25, %v2093_v7  ;;  %v2322_v31 = vadd.f32 %v2291_v28, %v2231_v4  ;;  %v1565_v32 = vpop.f32.mrb[7].mxu0 }
 0x144   : > { %v1596_v33 = vadd.f32 %v2321_v27, %v2093_v7  ;;  %v2323_v34 = vadd.f32 %v1565_v32, %v857_v5  ;;  %2308 = vmatprep.mubr.bf16.mxu1 %v1616_v29 }
 0x145   : > { %v1599_v35 = vadd.f32 %v2322_v31, %v2093_v7  ;;  %2309 = vmatmul.mubr.bf16.vlgmr.msra.gmra.mrb[8].mxu1 %v1617_v24  ;;  %v1606_v37 = vmax.f32 %v1598_v30, 0.0 }
 0x146   : > { %v1597_v36 = vadd.f32 %v2323_v34, %v2093_v7  ;;  %v1604_v39 = vmax.f32 %v1596_v33, 0.0 }
 0x147   : > { %v1607_v38 = vmax.f32 %v1599_v35, 0.0 }
 0x148   : > { %v1605_v40 = vmax.f32 %v1597_v36, 0.0 }
 0x149   : > { %v1619_v41 = vpack.c.bf16 %v1607_v38, %v1606_v37 }
 0x14a   : > { %v1618_v42 = vpack.c.bf16 %v1605_v40, %v1604_v39 }
 0x14c   : > { %2312 = vmatprep.mubr.bf16.mxu1 %v1618_v42 }
 0x14d   : > { %2313 = vmatmul.mubr.bf16.gmra.mrb[12].mxu1 %v1619_v41 }
 0x218   : > { %v2310_v43 = vpop.f32.mrb[8].mxu1 }
 0x219   : > { %v1718_v45 = vpop.f32.mrb[9].mxu1  ;;  %v1785_v47 = vadd.f32 %v2310_v43, %v2102_v44 }
 0x21a   : > { %v2311_v46 = vpop.f32.mrb[10].mxu1  ;;  %v1783_v50 = vadd.f32 %v2102_v44, %v1718_v45 }
 0x21b   : > { %v1786_v48 = vadd.f32 %v2311_v46, %v2102_v44  ;;  %v1721_v49 = vpop.f32.mrb[11].mxu1 }
 0x21c   : > { %v1784_v51 = vadd.f32 %v2102_v44, %v1721_v49 }
 0x21d   : > { %v2130_v52 = vpack.c.bf16 %v1786_v48, %v1785_v47 }
 0x21e   : > { %v2125_v53 = vpack.c.bf16 %v1784_v51, %v1783_v50 }
 0x21f   : > { %2142 = vst [vmem:[%s524_s11 + $0x8] sm:$0xff] %v2130_v52  }
 0x220   : > { %2126 = vst [vmem:[%s524_s11] sm:$0xff] %v2125_v53   ;;  %v2314_v54 = vpop.f32.mrb[12].mxu1 }
 0x221   : > { %v1734_v55 = vpop.f32.mrb[13].mxu1  ;;  %v1789_v57 = vadd.f32 %v2314_v54, %v2102_v44 }
 0x222   : > { %v2315_v56 = vpop.f32.mrb[14].mxu1  ;;  %v1787_v60 = vadd.f32 %v2102_v44, %v1734_v55 }
 0x223   : > { %v1790_v58 = vadd.f32 %v2315_v56, %v2102_v44  ;;  %v1737_v59 = vpop.f32.mrb[15].mxu1 }
 0x224   : > { %v1788_v61 = vadd.f32 %v2102_v44, %v1737_v59 }
 0x225   : > { %v2140_v62 = vpack.c.bf16 %v1790_v58, %v1789_v57 }
 0x226   : > { %v2135_v63 = vpack.c.bf16 %v1788_v61, %v1787_v60 }
 0x227   : > { %2144 = vst [vmem:[%s524_s11 + $0x18] sm:$0xff] %v2140_v62  }
 0x228   : > { %2143 = vst [vmem:[%s524_s11 + $0x10] sm:$0xff] %v2135_v63  }
 0x229 PF: > { %s20_s15 = sadd.s32 1, %s2480_s15   ;;  %s2761_s13 = smov %s2476_s14 }
 0x22a   : > { %p17_p5 = scmp.ge.s32.totalorder %s20_s15, 4   ;;  %s2762_s14 = smov %s2764_s16 }
 0x22c   :  { %19 = sbr.rel (!%p17_p5) target bundleno = 2 (0x2), region = 130 }

</bundles_post_ra>
